<compile_context>
chip_gen: v7x
topology: tpu7x:2x2x1
jax: 0.10.0
libtpu: 0.0.40
codegen_flags: <defaults>
</compile_context>

<pallas_src>
import math

import jax
import jax.numpy as jnp
from jax import lax
from jax.experimental import pallas as pl
from jax.experimental.pallas import tpu as pltpu


def _round_up(n: int, m: int) -> int:
    return ((n + m - 1) // m) * m


# ---------------------------------------------------------------------------
# Kernels (one batch tile per grid step; weights resident across steps).
# ---------------------------------------------------------------------------
def _mlp_kernel_hidden(x_ref, w0s_ref, b0s_ref, wh_ref, bh_ref, o_ref):
    """x_ref:[TM,Dp] bf16; w0s:[Dp,2*Hp] bf16 (first layer | shortcut);
    b0s:[1,2*Hp] f32; wh:[L-1,Hp,Hp] bf16; bh:[L-1,1,Hp] f32; o_ref:[TM,Hp] f32."""
    hp = o_ref.shape[1]
    x = x_ref[...]

    # One fused matmul for first layer + shortcut (N = 2*Hp), f32 accumulate.
    z = jnp.dot(x, w0s_ref[...], preferred_element_type=jnp.float32) + b0s_ref[...]
    h = jnp.maximum(z[:, :hp], 0.0)   # first layer + ReLU
    sc = z[:, hp:]                    # shortcut branch (lane-aligned split)

    # Hidden layers: bounded live ranges via fori_loop, unrolled for scheduling.
    n_hidden = wh_ref.shape[0]

    def body(i, h):
        y = jnp.dot(h.astype(wh_ref.dtype), wh_ref[i],
                    preferred_element_type=jnp.float32) + bh_ref[i]
        return jnp.maximum(y, 0.0)

    h = lax.fori_loop(0, n_hidden, body, h, unroll=True)

    o_ref[...] = (h + sc).astype(o_ref.dtype)


def _mlp_kernel_single(x_ref, w0s_ref, b0s_ref, o_ref):
    """num_layers == 1 variant (no stacked hidden weights)."""
    hp = o_ref.shape[1]
    x = x_ref[...]
    z = jnp.dot(x, w0s_ref[...], preferred_element_type=jnp.float32) + b0s_ref[...]
    h = jnp.maximum(z[:, :hp], 0.0)
    o_ref[...] = (h + z[:, hp:]).astype(o_ref.dtype)


# ---------------------------------------------------------------------------
# Wrapper: padding, bf16 cast, weight fusion, grid/BlockSpec setup.
# ---------------------------------------------------------------------------
def mlp_forward(x, params, *, tm=None):
    """x: [B, Din] f32. params: f32 dict (w0,b0,wh,bh,ws,bs), weights as (in,out)."""
    B, din = x.shape
    H = params["w0"].shape[1]
    n_hidden = params["wh"].shape[0]

    f32, bf16 = jnp.float32, jnp.bfloat16

    # Lane/sublane-aligned padded shapes.
    Dp = _round_up(din, 128)
    Hp = _round_up(H, 128)
    if tm is None:
        tm = 512 if B >= 512 else _round_up(B, 8)
    Bp = _round_up(B, tm)

    # Zero padding preserves semantics exactly: padded input features hit zero
    # weight rows; padded output features get 0 weight cols + 0 bias -> stay 0
    # through ReLU and the residual; sliced off at the end.
    xp = jnp.zeros((Bp, Dp), bf16).at[:B, :din].set(x.astype(bf16))

    # Fuse first-layer and shortcut weights along the output dim: [W0 | Ws].
    w0s = (jnp.zeros((Dp, 2 * Hp), bf16)
           .at[:din, :H].set(params["w0"].astype(bf16))
           .at[:din, Hp:Hp + H].set(params["ws"].astype(bf16)))
    b0s = (jnp.zeros((1, 2 * Hp), f32)
           .at[:, :H].set(params["b0"].astype(f32))
           .at[:, Hp:Hp + H].set(params["bs"].astype(f32)))

    # Block specs: x / out tiled over batch, weights resident (same block every step).
    x_spec = pl.BlockSpec((tm, Dp), lambda i: (i, 0))
    o_spec = pl.BlockSpec((tm, Hp), lambda i: (i, 0))
    w0s_spec = pl.BlockSpec((Dp, 2 * Hp), lambda i: (0, 0))
    b0s_spec = pl.BlockSpec((1, 2 * Hp), lambda i: (0, 0))

    weight_bytes = (2 * Dp * Hp + n_hidden * Hp * Hp) * 2 + (2 + n_hidden) * Hp * 4
    flops = 2 * Bp * Hp * (2 * Dp + n_hidden * Hp)
    bytes_accessed = Bp * Dp * 2 + weight_bytes + Bp * Hp * 4
    cost = pl.CostEstimate(flops=flops, transcendentals=0,
                           bytes_accessed=bytes_accessed)

    # VMEM budget: resident weights + double-buffered x/out tiles + activation
    # headroom; floor at 32 MiB, cap at 64 MiB so it stays legal on v7x.
    tile_bytes = tm * Dp * 2 + tm * Hp * 4
    footprint = weight_bytes + 2 * tile_bytes + 6 * tm * Hp * 4
    vmem_limit = int(min(64 * 2**20, max(32 * 2**20, 2 * footprint)))

    cparams = pltpu.CompilerParams(
        dimension_semantics=("parallel",),
        vmem_limit_bytes=vmem_limit,
    )

    if n_hidden > 0:
        wh = jnp.zeros((n_hidden, Hp, Hp), bf16).at[:, :H, :H].set(
            params["wh"].astype(bf16))
        bh = jnp.zeros((n_hidden, 1, Hp), f32).at[:, :, :H].set(
            params["bh"].astype(f32))
        kernel = _mlp_kernel_hidden
        in_specs = [
            x_spec, w0s_spec, b0s_spec,
            pl.BlockSpec((n_hidden, Hp, Hp), lambda i: (0, 0, 0)),
            pl.BlockSpec((n_hidden, 1, Hp), lambda i: (0, 0, 0)),
        ]
        args = (xp, w0s, b0s, wh, bh)
    else:
        kernel = _mlp_kernel_single
        in_specs = [x_spec, w0s_spec, b0s_spec]
        args = (xp, w0s, b0s)

    out = pl.pallas_call(
        kernel,
        out_shape=jax.ShapeDtypeStruct((Bp, Hp), jnp.float32),
        grid_spec=pltpu.PrefetchScalarGridSpec(
            num_scalar_prefetch=0,
            grid=(Bp // tm,),
            in_specs=in_specs,
            out_specs=o_spec,
        ),
        compiler_params=cparams,
        cost_estimate=cost,
    )(*args)

    return out[:B, :H]


# ---------------------------------------------------------------------------
# Param init (PyTorch Linear default: U(-1/sqrt(fan_in), 1/sqrt(fan_in))).
# ---------------------------------------------------------------------------
def init_mlp_params(key, input_dim, hidden_dim, num_layers):
    keys = jax.random.split(key, 2 * (num_layers + 1))

    def lin(kw, kb, fan_in, fan_out):
        bound = 1.0 / math.sqrt(fan_in)
        w = jax.random.uniform(kw, (fan_in, fan_out), jnp.float32, -bound, bound)
        b = jax.random.uniform(kb, (1, fan_out), jnp.float32, -bound, bound)
        return w, b

    w0, b0 = lin(keys[0], keys[1], input_dim, hidden_dim)

    wh_list, bh_list = [], []
    for i in range(num_layers - 1):
        w, b = lin(keys[2 + 2 * i], keys[3 + 2 * i], hidden_dim, hidden_dim)
        wh_list.append(w)
        bh_list.append(b[None])  # (1, 1, H)
    if num_layers - 1 > 0:
        wh = jnp.stack(wh_list, axis=0)          # (L-1, H, H)
        bh = jnp.concatenate(bh_list, axis=0)    # (L-1, 1, H)
    else:
        wh = jnp.zeros((0, hidden_dim, hidden_dim), jnp.float32)
        bh = jnp.zeros((0, 1, hidden_dim), jnp.float32)

    ws, bs = lin(keys[-2], keys[-1], input_dim, hidden_dim)
    return {"w0": w0, "b0": b0, "wh": wh, "bh": bh, "ws": ws, "bs": bs}


def mlp_reference(x, params):
    """Pure-JAX reference matching the kernel's numerics (bf16 weights, f32 acc)."""
    bf16 = jnp.bfloat16
    xb = x.astype(bf16)
    h = jnp.dot(xb, params["w0"].astype(bf16),
                preferred_element_type=jnp.float32) + params["b0"]
    h = jnp.maximum(h, 0.0)
    for i in range(params["wh"].shape[0]):
        h = jnp.dot(h.astype(bf16), params["wh"][i].astype(bf16),
                    preferred_element_type=jnp.float32) + params["bh"][i]
        h = jnp.maximum(h, 0.0)
    sc = jnp.dot(xb, params["ws"].astype(bf16),
                 preferred_element_type=jnp.float32) + params["bs"]
    return h + sc


if __name__ == "__main__":
    B, INPUT_DIM, HIDDEN_DIM, NUM_LAYERS = 8, 16, 32, 3

    key = jax.random.PRNGKey(0)
    kx, kp = jax.random.split(key)
    x = jax.random.normal(kx, (B, INPUT_DIM), jnp.float32)
    params = init_mlp_params(kp, INPUT_DIM, HIDDEN_DIM, NUM_LAYERS)

    out = mlp_forward(x, params)
    out = jax.block_until_ready(out)

    ref = mlp_reference(x, params)
    assert out.shape == (B, HIDDEN_DIM)
    assert jnp.allclose(out, ref, atol=1e-2, rtol=1e-2), "mismatch vs reference"

    # Also exercise the num_layers == 1 path (no hidden weight stack).
    params1 = init_mlp_params(kp, INPUT_DIM, HIDDEN_DIM, 1)
    out1 = jax.block_until_ready(mlp_forward(x, params1))
    ref1 = mlp_reference(x, params1)
    assert out1.shape == (B, HIDDEN_DIM)
    assert jnp.allclose(out1, ref1, atol=1e-2, rtol=1e-2), "mismatch (L=1) vs reference"

    print("KERNEL_OK")
</pallas_src>

<mosaic_0001>
module attributes {stable_mosaic.version = 11 : i64} {
  func.func @_mlp_kernel_hidden(%arg0: i32, %arg1: memref<8x128xbf16, #tpu.memory_space<vmem>>, %arg2: memref<128x256xbf16, #tpu.memory_space<vmem>>, %arg3: memref<1x256xf32, #tpu.memory_space<vmem>>, %arg4: memref<2x128x128xbf16, #tpu.memory_space<vmem>>, %arg5: memref<2x1x128xf32, #tpu.memory_space<vmem>>, %arg6: memref<8x128xf32, #tpu.memory_space<vmem>>) attributes {dimension_semantics = [#tpu.dimension_semantics<parallel>], iteration_bounds = array<i64: 1>, scalar_prefetch = 0 : i64, scratch_operands = 0 : i64, tpu.core_type = #tpu.core_type<tc>, window_params = [{transform_indices = @transform_0, window_bounds = array<i64: 8, 128>}, {pipeline_mode = #tpu.pipeline_mode<synchronous>, transform_indices = @transform_1, window_bounds = array<i64: 128, 256>}, {pipeline_mode = #tpu.pipeline_mode<synchronous>, transform_indices = @transform_2, window_bounds = array<i64: 1, 256>}, {pipeline_mode = #tpu.pipeline_mode<synchronous>, transform_indices = @transform_3, window_bounds = array<i64: 2, 128, 128>}, {pipeline_mode = #tpu.pipeline_mode<synchronous>, transform_indices = @transform_4, window_bounds = array<i64: 2, 1, 128>}, {transform_indices = @transform_5, window_bounds = array<i64: 8, 128>}]} {
    %c0 = arith.constant 0 : index
    %c0_0 = arith.constant 0 : index
    %0 = vector.load %arg1[%c0, %c0_0] : memref<8x128xbf16, #tpu.memory_space<vmem>>, vector<8x128xbf16>
    %c0_1 = arith.constant 0 : index
    %c0_2 = arith.constant 0 : index
    %1 = vector.load %arg2[%c0_1, %c0_2] : memref<128x256xbf16, #tpu.memory_space<vmem>>, vector<128x256xbf16>
    %cst = arith.constant dense<0.000000e+00> : vector<8x256xf32>
    %2 = tpu.matmul %0, %1, %cst {dimension_numbers = #tpu.dot_dimension_numbers<[1], [0], [0], [1], [0, 0, 1, 1], [], []>} : vector<8x128xbf16>, vector<128x256xbf16>, vector<8x256xf32> -> vector<8x256xf32>
    %c0_3 = arith.constant 0 : index
    %c0_4 = arith.constant 0 : index
    %3 = vector.load %arg3[%c0_3, %c0_4] : memref<1x256xf32, #tpu.memory_space<vmem>>, vector<1x256xf32>
    %4 = vector.broadcast %3 : vector<1x256xf32> to vector<8x256xf32>
    %5 = arith.addf %2, %4 : vector<8x256xf32>
    %6 = vector.extract_strided_slice %5 {offsets = [0, 0], sizes = [8, 128], strides = [1, 1]} : vector<8x256xf32> to vector<8x128xf32>
    %cst_5 = arith.constant 0.000000e+00 : f32
    %7 = vector.broadcast %cst_5 : f32 to vector<8x128xf32>
    %8 = arith.maximumf %6, %7 : vector<8x128xf32>
    %9 = vector.extract_strided_slice %5 {offsets = [0, 128], sizes = [8, 128], strides = [1, 1]} : vector<8x256xf32> to vector<8x128xf32>
    %c0_i32 = arith.constant 0 : i32
    %10 = arith.truncf %8 : vector<8x128xf32> to vector<8x128xbf16>
    %11 = arith.index_cast %c0_i32 : i32 to index
    %c0_6 = arith.constant 0 : index
    %c0_7 = arith.constant 0 : index
    %12 = vector.load %arg4[%11, %c0_6, %c0_7] : memref<2x128x128xbf16, #tpu.memory_space<vmem>>, vector<1x128x128xbf16>
    %13 = vector.shape_cast %12 : vector<1x128x128xbf16> to vector<128x128xbf16>
    %cst_8 = arith.constant dense<0.000000e+00> : vector<8x128xf32>
    %14 = tpu.matmul %10, %13, %cst_8 {dimension_numbers = #tpu.dot_dimension_numbers<[1], [0], [0], [1], [0, 0, 1, 1], [], []>} : vector<8x128xbf16>, vector<128x128xbf16>, vector<8x128xf32> -> vector<8x128xf32>
    %15 = arith.index_cast %c0_i32 : i32 to index
    %c0_9 = arith.constant 0 : index
    %c0_10 = arith.constant 0 : index
    %16 = vector.load %arg5[%15, %c0_9, %c0_10] : memref<2x1x128xf32, #tpu.memory_space<vmem>>, vector<1x1x128xf32>
    %17 = vector.shape_cast %16 : vector<1x1x128xf32> to vector<1x128xf32>
    %18 = vector.broadcast %17 : vector<1x128xf32> to vector<8x128xf32>
    %19 = arith.addf %14, %18 : vector<8x128xf32>
    %cst_11 = arith.constant 0.000000e+00 : f32
    %20 = vector.broadcast %cst_11 : f32 to vector<8x128xf32>
    %21 = arith.maximumf %19, %20 : vector<8x128xf32>
    %c1_i32 = arith.constant 1 : i32
    %22 = arith.truncf %21 : vector<8x128xf32> to vector<8x128xbf16>
    %23 = arith.index_cast %c1_i32 : i32 to index
    %c0_12 = arith.constant 0 : index
    %c0_13 = arith.constant 0 : index
    %24 = vector.load %arg4[%23, %c0_12, %c0_13] : memref<2x128x128xbf16, #tpu.memory_space<vmem>>, vector<1x128x128xbf16>
    %25 = vector.shape_cast %24 : vector<1x128x128xbf16> to vector<128x128xbf16>
    %cst_14 = arith.constant dense<0.000000e+00> : vector<8x128xf32>
    %26 = tpu.matmul %22, %25, %cst_14 {dimension_numbers = #tpu.dot_dimension_numbers<[1], [0], [0], [1], [0, 0, 1, 1], [], []>} : vector<8x128xbf16>, vector<128x128xbf16>, vector<8x128xf32> -> vector<8x128xf32>
    %27 = arith.index_cast %c1_i32 : i32 to index
    %c0_15 = arith.constant 0 : index
    %c0_16 = arith.constant 0 : index
    %28 = vector.load %arg5[%27, %c0_15, %c0_16] : memref<2x1x128xf32, #tpu.memory_space<vmem>>, vector<1x1x128xf32>
    %29 = vector.shape_cast %28 : vector<1x1x128xf32> to vector<1x128xf32>
    %30 = vector.broadcast %29 : vector<1x128xf32> to vector<8x128xf32>
    %31 = arith.addf %26, %30 : vector<8x128xf32>
    %cst_17 = arith.constant 0.000000e+00 : f32
    %32 = vector.broadcast %cst_17 : f32 to vector<8x128xf32>
    %33 = arith.maximumf %31, %32 : vector<8x128xf32>
    %c2_i32 = arith.constant 2 : i32
    %34 = arith.addf %33, %9 : vector<8x128xf32>
    %c0_18 = arith.constant 0 : index
    %c0_19 = arith.constant 0 : index
    %35 = vector.load %arg6[%c0_18, %c0_19] : memref<8x128xf32, #tpu.memory_space<vmem>>, vector<8x128xf32>
    tpu.vector_store %arg6[%c0_18, %c0_19], %34 {strides = array<i32>} : memref<8x128xf32, #tpu.memory_space<vmem>>, vector<8x128xf32>,
    return
  }
  func.func @transform_0(%arg0: i32) -> (i32, i32) {
    %c0_i32 = arith.constant 0 : i32
    %c0_i32_0 = arith.constant 0 : i32
    return %arg0, %c0_i32 : i32, i32
  }
  func.func @transform_1(%arg0: i32) -> (i32, i32) {
    %c0_i32 = arith.constant 0 : i32
    %c0_i32_0 = arith.constant 0 : i32
    %c0_i32_1 = arith.constant 0 : i32
    return %c0_i32, %c0_i32_0 : i32, i32
  }
  func.func @transform_2(%arg0: i32) -> (i32, i32) {
    %c0_i32 = arith.constant 0 : i32
    %c0_i32_0 = arith.constant 0 : i32
    %c0_i32_1 = arith.constant 0 : i32
    return %c0_i32, %c0_i32_0 : i32, i32
  }
  func.func @transform_3(%arg0: i32) -> (i32, i32, i32) {
    %c0_i32 = arith.constant 0 : i32
    %c0_i32_0 = arith.constant 0 : i32
    %c0_i32_1 = arith.constant 0 : i32
    %c0_i32_2 = arith.constant 0 : i32
    return %c0_i32, %c0_i32_0, %c0_i32_1 : i32, i32, i32
  }
  func.func @transform_4(%arg0: i32) -> (i32, i32, i32) {
    %c0_i32 = arith.constant 0 : i32
    %c0_i32_0 = arith.constant 0 : i32
    %c0_i32_1 = arith.constant 0 : i32
    %c0_i32_2 = arith.constant 0 : i32
    return %c0_i32, %c0_i32_0, %c0_i32_1 : i32, i32, i32
  }
  func.func @transform_5(%arg0: i32) -> (i32, i32) {
    %c0_i32 = arith.constant 0 : i32
    %c0_i32_0 = arith.constant 0 : i32
    return %arg0, %c0_i32 : i32, i32
  }
}

</mosaic_0001>

<bundles_post_ra>
// kernel: tpu_custom_call.1
= control target key start
LH: loop header
LB: loop body
LE: loop exit
PB: predicated region body
PF: predicated region fallthrough
CT: control target
= control target key end

     0   :  { %10 = vsyncpa [#allocation3], 0  ;;  %s812_s0 = inlined_call_operand.hbm [shape: bf16[8,128], index: 0, kind: input, shape index: {}]   ;;  %s813_s1 = inlined_call_operand.hbm [shape: bf16[128,256], index: 1, kind: input, shape index: {}]   ;;  %s814_s2 = inlined_call_operand.vmem [shape: f32[1,256], index: 2, kind: input, shape index: {}]   ;;  %s815_s3 = inlined_call_operand.hbm [shape: bf16[2,128,128], index: 3, kind: input, shape index: {}]   ;;  %s816_s4 = inlined_call_operand.vmem [shape: f32[2,1,128], index: 4, kind: input, shape index: {}]   ;;  %s817_s5 = inlined_call_operand.hbm [shape: f32[8,128], index: 5, kind: output, shape index: {}]  }
   0x1   :  { %11 = vsyncpa [#allocation6], 0 }
   0x2   :  { %12 = vsyncpa [#allocation4], 0  ;;  %s696_s18 = smov [#allocation5]   ;;  %s602_s22 = scalar_lea.hbm %s813_s1, 2048 }
   0x3   :  { %s28_s19 = sshll.u32 %s696_s18, 4  ;;  %p603_p0 = scmp.ne.s32.totalorder %s813_s1, %s602_s22  ;;  %s29_s19 = int_to_ptr.vmem [resolvable:$true] %s28_s19 }
   0x4   :  { %p606_p1 = scmp.lt.u32.totalorder %s602_s22, %s813_s1 }
   0x6   :  { %p608_p2 = pnand %p606_p1, %p603_p0 }
   0x8   :  { %611 = shalt.err (!%p608_p2)
}
   0x9   :  { %s612_s27 = scalar_lea.vmem %s29_s19, 2048  ;;  %p617_p4 = scmp.lt.s32.totalorder %s29_s19, %s29_s19 }
   0xa   :  { %p613_p3 = scmp.ne.s32.totalorder %s29_s19, %s612_s27  ;;  %p618_p5 = scmp.lt.s32.totalorder %s612_s27, %s612_s27 }
   0xc   :  { %p619_p6 = por %p618_p5, %p617_p4 }
   0xe   :  { %p620_p7 = pnand %p619_p6, %p613_p3 }
  0x10   :  { %623 = shalt.err (!%p620_p7)
}
  0x11   :  { %s697_s28 = smov 128   ;;  %s698_s29 = smov 8  }
  0x12   :  { %34 = dma.hbm_to_vmem [thread:$0]  %s813_s1, 2048, %s29_s19, [#allocation6], %s697_s28, %s697_s28, %s698_s29  }
  0x13   :  { %s699_s7 = smov [#allocation2]   ;;  %s700_s9 = smov [#allocation7]  }
  0x14   :  { %s19_s8 = sshll.u32 %s699_s7, 4  ;;  %s42_s10 = sshll.u32 %s700_s9, 4  ;;  %s20_s8 = int_to_ptr.vmem [resolvable:$true] %s19_s8  ;;  %s43_s10 = int_to_ptr.vmem [resolvable:$true] %s42_s10 }
  0x15   :  { %s624_s13 = scalar_lea.hbm %s812_s0, 64 }
  0x16   :  { %p625_p8 = scmp.ne.s32.totalorder %s812_s0, %s624_s13  ;;  %p628_p9 = scmp.lt.u32.totalorder %s624_s13, %s812_s0 }
  0x18   :  { %p630_p10 = pnand %p628_p9, %p625_p8 }
  0x1a   :  { %633 = shalt.err (!%p630_p10)
}
  0x1b   :  { %s634_s1 = scalar_lea.vmem %s20_s8, 64  ;;  %p639_p12 = scmp.lt.s32.totalorder %s20_s8, %s20_s8 }
  0x1c   :  { %p635_p11 = scmp.ne.s32.totalorder %s20_s8, %s634_s1  ;;  %p640_p13 = scmp.lt.s32.totalorder %s634_s1, %s634_s1 }
  0x1e   :  { %p641_p0 = por %p640_p13, %p639_p12 }
  0x20   :  { %p642_p1 = pnand %p641_p0, %p635_p11 }
  0x22   :  { %645 = shalt.err (!%p642_p1)
}
  0x23   :  { %22 = dma.hbm_to_vmem [thread:$0]  %s812_s0, 64, %s20_s8, [#allocation3]  }
  0x24   :  { %s646_s22 = scalar_lea.hbm %s815_s3, 2048 }
  0x25   :  { %p647_p2 = scmp.ne.s32.totalorder %s815_s3, %s646_s22  ;;  %p650_p3 = scmp.lt.u32.totalorder %s646_s22, %s815_s3 }
  0x27   :  { %p652_p4 = pnand %p650_p3, %p647_p2 }
  0x29   :  { %655 = shalt.err (!%p652_p4)
}
  0x2a   :  { %s656_s27 = scalar_lea.vmem %s43_s10, 2048  ;;  %p661_p6 = scmp.lt.s32.totalorder %s43_s10, %s43_s10 }
  0x2b   :  { %p657_p5 = scmp.ne.s32.totalorder %s43_s10, %s656_s27  ;;  %p662_p7 = scmp.lt.s32.totalorder %s656_s27, %s656_s27 }
  0x2d   :  { %p663_p8 = por %p662_p7, %p661_p6 }
  0x2f   :  { %p664_p9 = pnand %p663_p8, %p657_p5 }
  0x31   :  { %667 = shalt.err (!%p664_p9)
}
  0x32   :  { %s701_s0 = smov 64   ;;  %s702_s28 = smov 4  }
  0x33   :  { %48 = dma.hbm_to_vmem [thread:$0]  %s815_s3, 2048, %s43_s10, [#allocation6], %s701_s0, %s701_s0, %s702_s28  }
  0x34   :  { %690 = dma.done.wait [#allocation3], 64  }
  0x35   :  { %691 = vsyncadd [#allocation3], 4294967232 }
  0x36   :  { %692 = dma.done.wait [#allocation6], 4096  }
  0x37   :  { %693 = vsyncadd [#allocation6], 4294963200  ;;  %v703_v0 = vmov 0   ;;  %v704_v1 = vmov 0.0   ;;  %v562_v2 = vld [vmem:[#allocation5 + $0x4] ss:$8 sps:$4 sm:$0xff]   ;;  %v80_v33 = vlaneseq }
  0x38   :  { %202 = vmatprep.mubr.bf16.mxu0 %v703_v0  ;;  %511 = vmatprep.subr.bf16.mxu1 %v704_v1  ;;  %v564_v3 = vld [vmem:[#allocation5] ss:$8 sps:$4 sm:$0xff]   ;;  %v565_v4 = vld [vmem:[#allocation5 + $0x14] ss:$8 sps:$4 sm:$0xff]   ;;  %v567_v5 = vld [vmem:[#allocation5 + $0x10] ss:$8 sps:$4 sm:$0xff]  }
  0x39   :  { %170 = vmatprep.subr.bf16.mxu0 %v562_v2  ;;  %v568_v6 = vld [vmem:[#allocation5 + $0x24] ss:$8 sps:$4 sm:$0xff]   ;;  %v570_v7 = vld [vmem:[#allocation5 + $0x20] ss:$8 sps:$4 sm:$0xff]   ;;  %v571_v8 = vld [vmem:[#allocation5 + $0x34] ss:$8 sps:$4 sm:$0xff]  }
  0x3a   :  { %171 = vmatpush1.bf16.msra.mxu0 %v564_v3  ;;  %v573_v9 = vld [vmem:[#allocation5 + $0x30] ss:$8 sps:$4 sm:$0xff]   ;;  %v586_v10 = vld [vmem:[#allocation7] sm:$0xff]   ;;  %v587_v12 = vld [vmem:[#allocation7 + $0x8] sm:$0xff]   ;;  %vm705_vm0 = vmmov 0   ;;  %v81_v34 = vshrl.u32 %v80_v33, 7 }
  0x3b   :  { %172 = vmatprep.subr.bf16.mxu0 %v565_v4  ;;  %v574_v11 = vld [vmem:[#allocation5 + $0x44] ss:$8 sps:$4 sm:$0xff]   ;;  %512 = vmatpush3.bf16.msra.mxu1 %v586_v10  ;;  %v576_v13 = vld [vmem:[#allocation5 + $0x40] ss:$8 sps:$4 sm:$0xff]   ;;  %v577_v14 = vld [vmem:[#allocation5 + $0x54] ss:$8 sps:$4 sm:$0xff]  }
  0x3c   :  { %513 = vmatprep.subr.bf16.mxu1 %v704_v1  ;;  %v579_v15 = vld [vmem:[#allocation5 + $0x50] ss:$8 sps:$4 sm:$0xff]   ;;  %v580_v17 = vld [vmem:[#allocation5 + $0x64] ss:$8 sps:$4 sm:$0xff]   ;;  %v582_v19 = vld [vmem:[#allocation5 + $0x60] ss:$8 sps:$4 sm:$0xff]   ;;  %527 = vmatprep.mubr.msk.bf16.mxu1 %vm705_vm0, %v704_v1 }
  0x3d   :  { %v588_v16 = vld [vmem:[#allocation7 + $0x10] sm:$0xff]   ;;  %v589_v18 = vld [vmem:[#allocation7 + $0x18] sm:$0xff]   ;;  %v590_v21 = vld [vmem:[#allocation7 + $0x20] sm:$0xff]   ;;  %v82_v35 = vsub.s32 0, %v81_v34  ;;  %v86_v55 = vsub.s32 1, %v81_v34  ;;  %s706_s10 = smov [#allocation8]  }
  0x3e   :  { %173 = vmatpush1.bf16.msra.mxu0 %v567_v5  ;;  %v583_v20 = vld [vmem:[#allocation5 + $0x74] ss:$8 sps:$4 sm:$0xff]   ;;  %v585_v22 = vld [vmem:[#allocation5 + $0x70] ss:$8 sps:$4 sm:$0xff]   ;;  %v591_v23 = vld [vmem:[#allocation7 + $0x28] sm:$0xff]   ;;  %s448_s11 = sshll.u32 %s706_s10, 4  ;;  %s449_s11 = int_to_ptr.vmem [resolvable:$true] %s448_s11 }
  0x3f   :  { %174 = vmatprep.subr.bf16.mxu0 %v568_v6  ;;  %514 = vmatpush3.bf16.msra.mxu1 %v587_v12  ;;  %v61_v24 = vld [vmem:[#allocation2] sm:$0xf]  ;;  %v592_v25 = vld [vmem:[#allocation7 + $0x30] sm:$0xff]   ;;  %v594_v27 = vld [vmem:[#allocation7 + $0x40] sm:$0xff]   ;;  %s668_s12 = scalar_lea.vmem %s449_s11, 128  ;;  %p673_p11 = scmp.lt.s32.totalorder %s449_s11, %s449_s11 }
  0x40   :  { %515 = vmatprep.subr.bf16.mxu1 %v704_v1  ;;  %v593_v26 = vld [vmem:[#allocation7 + $0x38] sm:$0xff]   ;;  %v595_v28 = vld [vmem:[#allocation7 + $0x48] sm:$0xff]   ;;  %v596_v29 = vld [vmem:[#allocation7 + $0x50] sm:$0xff]   ;;  %p669_p10 = scmp.ne.s32.totalorder %s449_s11, %s668_s12  ;;  %p674_p12 = scmp.lt.s32.totalorder %s668_s12, %s668_s12 }
  0x41   :  { %v597_v30 = vld [vmem:[#allocation7 + $0x58] sm:$0xff]   ;;  %v598_v31 = vld [vmem:[#allocation7 + $0x60] sm:$0xff]   ;;  %v599_v32 = vld [vmem:[#allocation7 + $0x68] sm:$0xff]  }
  0x42   :  { %175 = vmatpush1.bf16.msra.mxu0 %v570_v7  ;;  %v78_v36 = vld [vmem:[%s814_s2] sm:$0x3]  ;;  %v600_v45 = vld [vmem:[#allocation7 + $0x70] sm:$0xff]   ;;  %p675_p13 = por %p674_p12, %p673_p11 }
  0x43   :  { %176 = vmatprep.subr.bf16.mxu0 %v571_v8  ;;  %516 = vmatpush3.bf16.msra.mxu1 %v588_v16  ;;  %v83_v37 = vrot.slane %v78_v36, %v82_v35  ;;  %v601_v46 = vld [vmem:[#allocation7 + $0x78] sm:$0xff]   ;;  %v87_v57 = vrot.slane %v78_v36, %v86_v55 }
  0x44   :  { %517 = vmatprep.subr.bf16.mxu1 %v704_v1  ;;  %v474_v47 = vld [vmem:[%s816_s4] ss:$0 sm:$0xff]  ;;  %v484_v56 = vld [vmem:[%s816_s4 + $0x1] ss:$0 sm:$0xff]  ;;  %p676_p0 = pnand %p675_p13, %p669_p10 }
  0x46   :  { %177 = vmatpush1.bf16.msra.mxu0 %v573_v9 }
  0x47   :  { %178 = vmatprep.subr.bf16.mxu0 %v574_v11  ;;  %518 = vmatpush3.bf16.msra.mxu1 %v589_v18 }
  0x48   :  { %519 = vmatprep.subr.bf16.mxu1 %v704_v1 }
  0x4a   :  { %179 = vmatpush1.bf16.msra.mxu0 %v576_v13 }
  0x4b   :  { %180 = vmatprep.subr.bf16.mxu0 %v577_v14  ;;  %520 = vmatpush3.bf16.msra.mxu1 %v590_v21 }
  0x4c   :  { %521 = vmatprep.subr.bf16.mxu1 %v704_v1 }
  0x4e   :  { %181 = vmatpush1.bf16.msra.mxu0 %v579_v15 }
  0x4f   :  { %182 = vmatprep.subr.bf16.mxu0 %v580_v17  ;;  %522 = vmatpush3.bf16.msra.mxu1 %v591_v23 }
  0x50   :  { %523 = vmatprep.subr.bf16.mxu1 %v704_v1 }
  0x52   :  { %183 = vmatpush1.bf16.msra.mxu0 %v582_v19 }
  0x53   :  { %184 = vmatprep.subr.bf16.mxu0 %v583_v20  ;;  %524 = vmatpush3.bf16.msra.mxu1 %v592_v25 }
  0x54   :  { %525 = vmatprep.subr.bf16.mxu1 %v704_v1 }
  0x56   :  { %185 = vmatpush1.bf16.msra.mxu0 %v585_v22 }
  0x57   :  { %531 = vmatprep.subr.bf16.mxu0 %v704_v1  ;;  %526 = vmatpush3.bf16.msra.mxu1 %v593_v26 }
  0x59   :  { %203 = vmatmul.mubr.bf16.vlgmr.msra.gmra.mrb[0].mxu0 %v61_v24 }
  0x5a   :  { %547 = vmatprep.mubr.msk.bf16.mxu0 %vm705_vm0, %v704_v1  ;;  %532 = vmatpush3.bf16.msra.mxu0 %v594_v27 }
  0x5b   :  { %533 = vmatprep.subr.bf16.mxu0 %v704_v1 }
  0x5e   :  { %534 = vmatpush3.bf16.msra.mxu0 %v595_v28 }
  0x5f   :  { %535 = vmatprep.subr.bf16.mxu0 %v704_v1 }
  0x62   :  { %536 = vmatpush3.bf16.msra.mxu0 %v596_v29 }
  0x63   :  { %537 = vmatprep.subr.bf16.mxu0 %v704_v1 }
  0x66   :  { %538 = vmatpush3.bf16.msra.mxu0 %v597_v30 }
  0x67   :  { %539 = vmatprep.subr.bf16.mxu0 %v704_v1 }
  0x6a   :  { %540 = vmatpush3.bf16.msra.mxu0 %v598_v31 }
  0x6b   :  { %541 = vmatprep.subr.bf16.mxu0 %v704_v1 }
  0x6e   :  { %542 = vmatpush3.bf16.msra.mxu0 %v599_v32 }
  0x6f   :  { %543 = vmatprep.subr.bf16.mxu0 %v704_v1 }
  0x72   :  { %544 = vmatpush3.bf16.msra.mxu0 %v600_v45 }
  0x73   :  { %545 = vmatprep.subr.bf16.mxu0 %v704_v1 }
  0x76   :  { %546 = vmatpush3.bf16.msra.mxu0 %v601_v46 }
 0x12c   :  { %v204_v38 = vpop.f32.mrb[0].mxu0 }
 0x12d   :  { %v205_v39 = vadd.f32 %v204_v38, %v83_v37  ;;  %v206_v40 = vpop.f32.mrb[1].mxu0 }
 0x12e   :  { %v208_v41 = vpop.f32.mrb[2].mxu0  ;;  %v207_v62 = vadd.f32 %v206_v40, %v87_v57 }
 0x12f   :  { %v211_v42 = vmax.f32 %v205_v39, 0.0  ;;  %v209_v43 = vpop.f32.mrb[3].mxu0 }
 0x131   :  { %v212_v44 = vpack.c.bf16 %v211_v42, %v211_v42 }
 0x133   :  { %528 = vmatmul.mubr.bf16.vlgmr.msra.gmra.mrb[0].mxu1 %v212_v44 }
 0x206   :  { %v318_v48 = vpop.f32.mrb[0].mxu1 }
 0x207   :  { %v319_v49 = vadd.f32 %v474_v47, %v318_v48  ;;  %v529_v50 = vpop.f32.mrb[1].mxu1 }
 0x208   :  { %v321_v51 = vpop.f32.mrb[2].mxu1 }
 0x209   :  { %v324_v52 = vmax.f32 %v319_v49, 0.0  ;;  %v530_v53 = vpop.f32.mrb[3].mxu1 }
 0x20b   :  { %v325_v54 = vpack.c.bf16 %v324_v52, %v324_v52 }
 0x20d   :  { %548 = vmatmul.mubr.bf16.vlgmr.msra.gmra.mrb[4].mxu0 %v325_v54 }
 0x2e0   :  { %v433_v58 = vpop.f32.mrb[4].mxu0 }
 0x2e1   :  { %v434_v59 = vadd.f32 %v484_v56, %v433_v58  ;;  %v549_v60 = vpop.f32.mrb[5].mxu0 }
 0x2e2   :  { %v436_v61 = vpop.f32.mrb[6].mxu0 }
 0x2e3   :  { %v439_v63 = vmax.f32 %v434_v59, 0.0  ;;  %v550_v0 = vpop.f32.mrb[7].mxu0 }
 0x2e5   :  { %v440_v1 = vadd.f32 %v439_v63, %v207_v62 }
 0x2e7   :  { %441 = vst [vmem:[#allocation8] sm:$0xff] %v440_v1 }
 0x2e8   :  { %679 = shalt.err (!%p676_p0)
}
 0x2e9   :  { %s680_s14 = scalar_lea.hbm %s817_s5, 128 }
 0x2ea   :  { %p681_p1 = scmp.ne.s32.totalorder %s817_s5, %s680_s14  ;;  %p684_p2 = scmp.lt.u32.totalorder %s680_s14, %s817_s5 }
 0x2ec   :  { %p686_p3 = pnand %p684_p2, %p681_p1 }
 0x2ee   :  { %689 = shalt.err (!%p686_p3)
}
 0x2ef   :  { %451 = dma.vmem_to_hbm [thread:$0]  %s449_s11, 128, %s817_s5, [#allocation4]  }
 0x2f0   :  { %694 = dma.done.wait [#allocation4], 128  }
 0x2f1   :  { %695 = vsyncadd [#allocation4], 4294967168 }
 0x2f2   :  { %455 = vsyncpa [#allocation3], 1 }
 0x2f3   :  { %456 = vsyncpa [#allocation6], 1 }
 0x2f4   :  { %457 = vsyncpa [#allocation4], 1 }

</bundles_post_ra>
